<compile_context>
chip_gen: v7x
topology: tpu7x:2x2x1
jax: 0.10.0
libtpu: 0.0.40
codegen_flags: <defaults>
</compile_context>

<pallas_src>
import functools
import math

import jax
import jax.numpy as jnp
from jax import lax
from jax.experimental import pallas as pl
from jax.experimental.pallas import tpu as pltpu

_LOG2 = math.log(2.0)
_LANE = 128
_SUBLANE = 8
_TARGET_BLOCK_ROWS = 8192      # (8192, 128) f32 = 4 MiB per input per pipeline buffer
_CHUNK_ROWS = 1024             # in-kernel chunk: keeps elementwise temps at ~0.5 MiB
_NUM_PARALLEL = 2              # leading 'parallel' axis (v7x: 2 TCs; harmless on 1-TC chips)
_VMEM_LIMIT_BYTES = 40 * 1024 * 1024
_MIN_PALLAS_ELEMS = 1 << 19    # below this, pallas_call launch/grid overhead dominates


def _round_down(a, b):
    return (a // b) * b


def _cdiv(a, b):
    return -(-a // b)


def _ml_loss_kernel(x_ref, y_ref, o_ref, *, rows, block_rows, chunk_rows,
                    blocks_per_slice, num_full_blocks, ragged):
    """Accumulates per-element (E_neg(y) - E_pos(x)) into a resident (8,128) acc."""

    @pl.when(pl.program_id(1) == 0)
    def _():
        o_ref[...] = jnp.zeros_like(o_ref)

    n_chunks = block_rows // chunk_rows

    def chunk_partial(c, valid_rows):
        start = c * chunk_rows
        if not isinstance(start, int):
            start = pl.multiple_of(start, chunk_rows)
        x = x_ref[pl.ds(start, chunk_rows), :].astype(jnp.float32)
        y = y_ref[pl.ds(start, chunk_rows), :].astype(jnp.float32)
        # 3 EUP pushes per element pair (2 exp + 1 log):
        #   softplus(-x) + softplus(y) - 2*log2
        ex = jnp.exp(-jnp.abs(x))
        ey = jnp.exp(-jnp.abs(y))
        contrib = (jnp.log((1.0 + ex) * (1.0 + ey))
                   + (jnp.maximum(y, 0.0) - jnp.minimum(x, 0.0) - 2.0 * _LOG2))
        if valid_rows is not None:
            row = start + lax.broadcasted_iota(jnp.int32, (chunk_rows, _LANE), 0)
            contrib = jnp.where(row < valid_rows, contrib, 0.0)
        # Reduce the chunk to one (8,128) vreg-shaped partial (VPU adds over the
        # split sublane axis only; the cross-lane reduce happens once in the wrapper).
        return jnp.sum(
            contrib.reshape(chunk_rows // _SUBLANE, _SUBLANE, _LANE), axis=0)

    def accumulate(valid_rows):
        if n_chunks == 1:
            acc = chunk_partial(0, valid_rows)
        else:
            acc = lax.fori_loop(
                0, n_chunks,
                lambda c, a: a + chunk_partial(c, valid_rows),
                jnp.zeros((_SUBLANE, _LANE), jnp.float32))
        o_ref[...] += acc

    if not ragged:
        accumulate(None)
    else:
        g = pl.program_id(0) * blocks_per_slice + pl.program_id(1)

        @pl.when(g < num_full_blocks)
        def _():
            accumulate(None)          # full blocks: no masking cost

        @pl.when(g >= num_full_blocks)
        def _():
            # Partial last block and redundant (clamped) grid steps: mask rows
            # beyond `rows`; redundant steps have valid_rows <= 0 -> contribute 0.
            accumulate(rows - g * block_rows)


def _mutual_loss_reference(X, Y, measure="JSD"):
    """Pure-JAX reference matching MutualLearningLoss.forward for all measures."""
    x = X.astype(jnp.float32)
    y = Y.astype(jnp.float32)
    sp = jax.nn.softplus
    if measure == "GAN":
        e_pos, e_neg = -sp(-x), sp(-y) + y
    elif measure == "JSD":
        e_pos, e_neg = _LOG2 - sp(-x), sp(-y) + y - _LOG2
    elif measure == "X2":
        e_pos, e_neg = x ** 2, -0.5 * (jnp.sqrt(y ** 2) + 1.0) ** 2
    elif measure == "KL":
        e_pos, e_neg = x + 1.0, jnp.exp(y)
    elif measure == "RKL":
        e_pos, e_neg = -jnp.exp(-x), y - 1.0
    elif measure == "H2":
        e_pos, e_neg = 1.0 - jnp.exp(-x), jnp.exp(y) - 1.0
    elif measure == "W1":
        e_pos, e_neg = x, y
    else:
        raise ValueError("Unknown measurement {}".format(measure))
    return jnp.mean(e_neg - e_pos)


def mutual_learning_loss(X, Y, weight=1.0, lamb=1.0, measure="JSD", *,
                         use_pallas=None, block_rows=None, chunk_rows=None):
    """JAX/Pallas equivalent of MutualLearningLoss.forward(X, Y, measure)."""
    # `weight` / `lamb` are stored on the PyTorch module but never used in forward().
    del weight, lamb
    assert X.shape == Y.shape, "X and Y must have the same shape"
    n = math.prod(X.shape)

    if measure != "JSD":
        # Non-default measures are trivial elementwise maps; XLA fusion handles them.
        return _mutual_loss_reference(X, Y, measure)

    if use_pallas is None:
        use_pallas = n >= _MIN_PALLAS_ELEMS
    if (not use_pallas) or n < _SUBLANE * _LANE:
        # Tiny inputs: fixed pallas_call launch + grid overhead dominates.
        return _mutual_loss_reference(X, Y, measure)

    x_flat = X.reshape(-1)
    y_flat = Y.reshape(-1)
    rem = n % _LANE
    if rem:
        # TODO(synk): the lane-misaligned case still pays one full jnp.pad copy; the
        # zero padding contributes exactly 0 to the sum so the result stays exact.
        pad = _LANE - rem
        x_flat = jnp.pad(x_flat, (0, pad))
        y_flat = jnp.pad(y_flat, (0, pad))
    rows = _cdiv(n, _LANE)
    x2d = x_flat.reshape(rows, _LANE)            # bitcast (no copy) when rem == 0
    y2d = y_flat.reshape(rows, _LANE)

    # --- static tiling --------------------------------------------------------
    if chunk_rows is None:
        chunk_rows = _CHUNK_ROWS
    chunk_rows = max(min(_round_down(chunk_rows, _SUBLANE),
                         _round_down(rows, _SUBLANE)), _SUBLANE)
    if block_rows is None:
        block_rows = _TARGET_BLOCK_ROWS
    block_rows = max(min(_round_down(block_rows, chunk_rows),
                         _round_down(rows, chunk_rows)), chunk_rows)

    num_blocks = _cdiv(rows, block_rows)
    bps = _cdiv(num_blocks, _NUM_PARALLEL)       # blocks per parallel slice
    num_full_blocks = rows // block_rows
    ragged = (_NUM_PARALLEL * bps * block_rows != rows)

    last_block = num_blocks - 1
    if _NUM_PARALLEL * bps == num_blocks:
        in_idx = lambda p, i: (p * bps + i, 0)
    else:
        # Redundant trailing grid steps re-read the last block; their contribution
        # is masked to zero in the kernel.
        in_idx = lambda p, i: (jnp.minimum(p * bps + i, last_block), 0)

    kernel = functools.partial(
        _ml_loss_kernel, rows=rows, block_rows=block_rows, chunk_rows=chunk_rows,
        blocks_per_slice=bps, num_full_blocks=num_full_blocks, ragged=ragged)

    partials = pl.pallas_call(
        kernel,
        out_shape=jax.ShapeDtypeStruct((_NUM_PARALLEL * _SUBLANE, _LANE), jnp.float32),
        grid_spec=pltpu.PrefetchScalarGridSpec(
            num_scalar_prefetch=0,
            grid=(_NUM_PARALLEL, bps),
            in_specs=[
                pl.BlockSpec((block_rows, _LANE), in_idx),
                pl.BlockSpec((block_rows, _LANE), in_idx),
            ],
            out_specs=pl.BlockSpec((_SUBLANE, _LANE), lambda p, i: (p, 0)),
        ),
        compiler_params=pltpu.CompilerParams(
            # TODO(synk): on v7x verify the leading 'parallel' axis really shards
            # across both TensorCores; if not, switch it to pltpu.CORE_PARALLEL.
            dimension_semantics=("parallel", "arbitrary"),
            vmem_limit_bytes=_VMEM_LIMIT_BYTES,
        ),
    )(x2d, y2d)

    # Single tiny cross-lane/sublane reduce of the (16,128) partials, then the mean.
    # Padded lanes/rows and redundant grid steps contribute exactly 0, so divide by n.
    return jnp.sum(partials) / jnp.float32(n)


if __name__ == "__main__":
    key = jax.random.PRNGKey(0)
    cases = [
        # (shape, kwargs) — small shapes; kwargs force specific kernel code paths.
        ((2, 4, 16, 16), {}),                                   # lane-aligned, single block
        ((3, 5, 24, 24), {}),                                   # n % 128 != 0 -> pad + row mask
        ((2, 9, 32, 32), dict(block_rows=32, chunk_rows=16)),   # multi-block acc + chunk loop + clamp
    ]
    for idx, (shape, kwargs) in enumerate(cases):
        kx, ky = jax.random.split(jax.random.fold_in(key, idx))
        X = jax.random.normal(kx, shape, dtype=jnp.float32)
        Y = jax.random.normal(ky, shape, dtype=jnp.float32)
        loss = jax.block_until_ready(
            mutual_learning_loss(X, Y, use_pallas=True, **kwargs))
        ref = jax.block_until_ready(_mutual_loss_reference(X, Y))
        assert jnp.allclose(loss, ref, atol=1e-5, rtol=1e-5), (shape, loss, ref)
    print("KERNEL_OK")
</pallas_src>

<mosaic_0001>
module attributes {stable_mosaic.version = 11 : i64} {
  func.func @_ml_loss_kernel(%arg0: i32, %arg1: i32, %arg2: memref<16x128xf32, #tpu.memory_space<vmem>>, %arg3: memref<16x128xf32, #tpu.memory_space<vmem>>, %arg4: memref<8x128xf32, #tpu.memory_space<vmem>>) attributes {dimension_semantics = [#tpu.dimension_semantics<parallel>, #tpu.dimension_semantics<arbitrary>], iteration_bounds = array<i64: 2, 1>, scalar_prefetch = 0 : i64, scratch_operands = 0 : i64, tpu.core_type = #tpu.core_type<tc>, window_params = [{transform_indices = @transform_0, window_bounds = array<i64: 16, 128>}, {transform_indices = @transform_1, window_bounds = array<i64: 16, 128>}, {transform_indices = @transform_2, window_bounds = array<i64: 8, 128>}]} {
    %c0_i32 = arith.constant 0 : i32
    %0 = arith.cmpi eq, %arg1, %c0_i32 : i32
    %1 = arith.extui %0 : i1 to i32
    %c0_i32_0 = arith.constant 0 : i32
    %2 = arith.cmpi ne, %1, %c0_i32_0 : i32
    scf.if %2 {
      %cst = arith.constant 0.000000e+00 : f32
      %11 = vector.broadcast %cst : f32 to vector<8x128xf32>
      %c0 = arith.constant 0 : index
      %c0_5 = arith.constant 0 : index
      %12 = vector.load %arg4[%c0, %c0_5] : memref<8x128xf32, #tpu.memory_space<vmem>>, vector<8x128xf32>
      tpu.vector_store %arg4[%c0, %c0_5], %11 {strides = array<i32>} : memref<8x128xf32, #tpu.memory_space<vmem>>, vector<8x128xf32>,
    } else {
    }
    %c1_i32 = arith.constant 1 : i32
    %3 = arith.muli %arg0, %c1_i32 : i32
    %4 = arith.addi %3, %arg1 : i32
    %c1_i32_1 = arith.constant 1 : i32
    %5 = arith.cmpi slt, %4, %c1_i32_1 : i32
    %6 = arith.extui %5 : i1 to i32
    %c0_i32_2 = arith.constant 0 : i32
    %7 = arith.cmpi ne, %6, %c0_i32_2 : i32
    scf.if %7 {
      %c0 = arith.constant 0 : index
      %c0_5 = arith.constant 0 : index
      %11 = vector.load %arg2[%c0, %c0_5] : memref<16x128xf32, #tpu.memory_space<vmem>>, vector<16x128xf32>
      %c0_6 = arith.constant 0 : index
      %c0_7 = arith.constant 0 : index
      %12 = vector.load %arg3[%c0_6, %c0_7] : memref<16x128xf32, #tpu.memory_space<vmem>>, vector<16x128xf32>
      %13 = math.absf %11 : vector<16x128xf32>
      %cst = arith.constant 0.000000e+00 : f32
      %14 = vector.broadcast %cst : f32 to vector<16x128xf32>
      %15 = arith.subf %14, %13 : vector<16x128xf32>
      %16 = math.exp %15 : vector<16x128xf32>
      %17 = math.absf %12 : vector<16x128xf32>
      %cst_8 = arith.constant 0.000000e+00 : f32
      %18 = vector.broadcast %cst_8 : f32 to vector<16x128xf32>
      %19 = arith.subf %18, %17 : vector<16x128xf32>
      %20 = math.exp %19 : vector<16x128xf32>
      %cst_9 = arith.constant 1.000000e+00 : f32
      %21 = vector.broadcast %cst_9 : f32 to vector<16x128xf32>
      %22 = arith.addf %21, %16 : vector<16x128xf32>
      %cst_10 = arith.constant 1.000000e+00 : f32
      %23 = vector.broadcast %cst_10 : f32 to vector<16x128xf32>
      %24 = arith.addf %23, %20 : vector<16x128xf32>
      %25 = arith.mulf %22, %24 : vector<16x128xf32>
      %26 = math.log %25 : vector<16x128xf32>
      %cst_11 = arith.constant 0.000000e+00 : f32
      %27 = vector.broadcast %cst_11 : f32 to vector<16x128xf32>
      %28 = arith.maximumf %12, %27 : vector<16x128xf32>
      %cst_12 = arith.constant 0.000000e+00 : f32
      %29 = vector.broadcast %cst_12 : f32 to vector<16x128xf32>
      %30 = arith.minimumf %11, %29 : vector<16x128xf32>
      %31 = arith.subf %28, %30 : vector<16x128xf32>
      %cst_13 = arith.constant 1.38629436 : f32
      %32 = vector.broadcast %cst_13 : f32 to vector<16x128xf32>
      %33 = arith.subf %31, %32 : vector<16x128xf32>
      %34 = arith.addf %26, %33 : vector<16x128xf32>
      %35 = vector.shape_cast %34 : vector<16x128xf32> to vector<2x8x128xf32>
      %cst_14 = arith.constant dense<0.000000e+00> : vector<8x128xf32>
      %36 = vector.multi_reduction <add>, %35, %cst_14 [0] : vector<2x8x128xf32> to vector<8x128xf32>
      %c0_15 = arith.constant 0 : index
      %c0_16 = arith.constant 0 : index
      %37 = vector.load %arg4[%c0_15, %c0_16] : memref<8x128xf32, #tpu.memory_space<vmem>>, vector<8x128xf32>
      %38 = arith.addf %37, %36 : vector<8x128xf32>
      %c0_17 = arith.constant 0 : index
      %c0_18 = arith.constant 0 : index
      %39 = vector.load %arg4[%c0_17, %c0_18] : memref<8x128xf32, #tpu.memory_space<vmem>>, vector<8x128xf32>
      tpu.vector_store %arg4[%c0_17, %c0_18], %38 {strides = array<i32>} : memref<8x128xf32, #tpu.memory_space<vmem>>, vector<8x128xf32>,
    } else {
    }
    %c1_i32_3 = arith.constant 1 : i32
    %8 = arith.cmpi sge, %4, %c1_i32_3 : i32
    %9 = arith.extui %8 : i1 to i32
    %c0_i32_4 = arith.constant 0 : i32
    %10 = arith.cmpi ne, %9, %c0_i32_4 : i32
    scf.if %10 {
      %c16_i32 = arith.constant 16 : i32
      %11 = arith.muli %4, %c16_i32 : i32
      %c16_i32_5 = arith.constant 16 : i32
      %12 = arith.subi %c16_i32_5, %11 : i32
      %c0 = arith.constant 0 : index
      %c0_6 = arith.constant 0 : index
      %13 = vector.load %arg2[%c0, %c0_6] : memref<16x128xf32, #tpu.memory_space<vmem>>, vector<16x128xf32>
      %c0_7 = arith.constant 0 : index
      %c0_8 = arith.constant 0 : index
      %14 = vector.load %arg3[%c0_7, %c0_8] : memref<16x128xf32, #tpu.memory_space<vmem>>, vector<16x128xf32>
      %15 = math.absf %13 : vector<16x128xf32>
      %cst = arith.constant 0.000000e+00 : f32
      %16 = vector.broadcast %cst : f32 to vector<16x128xf32>
      %17 = arith.subf %16, %15 : vector<16x128xf32>
      %18 = math.exp %17 : vector<16x128xf32>
      %19 = math.absf %14 : vector<16x128xf32>
      %cst_9 = arith.constant 0.000000e+00 : f32
      %20 = vector.broadcast %cst_9 : f32 to vector<16x128xf32>
      %21 = arith.subf %20, %19 : vector<16x128xf32>
      %22 = math.exp %21 : vector<16x128xf32>
      %cst_10 = arith.constant 1.000000e+00 : f32
      %23 = vector.broadcast %cst_10 : f32 to vector<16x128xf32>
      %24 = arith.addf %23, %18 : vector<16x128xf32>
      %cst_11 = arith.constant 1.000000e+00 : f32
      %25 = vector.broadcast %cst_11 : f32 to vector<16x128xf32>
      %26 = arith.addf %25, %22 : vector<16x128xf32>
      %27 = arith.mulf %24, %26 : vector<16x128xf32>
      %28 = math.log %27 : vector<16x128xf32>
      %cst_12 = arith.constant 0.000000e+00 : f32
      %29 = vector.broadcast %cst_12 : f32 to vector<16x128xf32>
      %30 = arith.maximumf %14, %29 : vector<16x128xf32>
      %cst_13 = arith.constant 0.000000e+00 : f32
      %31 = vector.broadcast %cst_13 : f32 to vector<16x128xf32>
      %32 = arith.minimumf %13, %31 : vector<16x128xf32>
      %33 = arith.subf %30, %32 : vector<16x128xf32>
      %cst_14 = arith.constant 1.38629436 : f32
      %34 = vector.broadcast %cst_14 : f32 to vector<16x128xf32>
      %35 = arith.subf %33, %34 : vector<16x128xf32>
      %36 = arith.addf %28, %35 : vector<16x128xf32>
      %37 = tpu.iota {dimensions = array<i32: 0>} : vector<16x128xi32>
      %c0_i32_15 = arith.constant 0 : i32
      %38 = vector.broadcast %c0_i32_15 : i32 to vector<16x128xi32>
      %39 = arith.addi %38, %37 : vector<16x128xi32>
      %40 = vector.broadcast %12 : i32 to vector<16x128xi32>
      %41 = arith.cmpi slt, %39, %40 : vector<16x128xi32>
      %cst_16 = arith.constant 0.000000e+00 : f32
      %42 = vector.broadcast %cst_16 : f32 to vector<16x128xf32>
      %43 = arith.select %41, %36, %42 : vector<16x128xi1>, vector<16x128xf32>
      %44 = vector.shape_cast %43 : vector<16x128xf32> to vector<2x8x128xf32>
      %cst_17 = arith.constant dense<0.000000e+00> : vector<8x128xf32>
      %45 = vector.multi_reduction <add>, %44, %cst_17 [0] : vector<2x8x128xf32> to vector<8x128xf32>
      %c0_18 = arith.constant 0 : index
      %c0_19 = arith.constant 0 : index
      %46 = vector.load %arg4[%c0_18, %c0_19] : memref<8x128xf32, #tpu.memory_space<vmem>>, vector<8x128xf32>
      %47 = arith.addf %46, %45 : vector<8x128xf32>
      %c0_20 = arith.constant 0 : index
      %c0_21 = arith.constant 0 : index
      %48 = vector.load %arg4[%c0_20, %c0_21] : memref<8x128xf32, #tpu.memory_space<vmem>>, vector<8x128xf32>
      tpu.vector_store %arg4[%c0_20, %c0_21], %47 {strides = array<i32>} : memref<8x128xf32, #tpu.memory_space<vmem>>, vector<8x128xf32>,
    } else {
    }
    return
  }
  func.func @transform_0(%arg0: i32, %arg1: i32) -> (i32, i32) {
    %c1_i32 = arith.constant 1 : i32
    %0 = arith.muli %arg0, %c1_i32 : i32
    %1 = arith.addi %0, %arg1 : i32
    %c0_i32 = arith.constant 0 : i32
    %2 = arith.minsi %1, %c0_i32 : i32
    %c0_i32_0 = arith.constant 0 : i32
    %c0_i32_1 = arith.constant 0 : i32
    return %2, %c0_i32_0 : i32, i32
  }
  func.func @transform_1(%arg0: i32, %arg1: i32) -> (i32, i32) {
    %c1_i32 = arith.constant 1 : i32
    %0 = arith.muli %arg0, %c1_i32 : i32
    %1 = arith.addi %0, %arg1 : i32
    %c0_i32 = arith.constant 0 : i32
    %2 = arith.minsi %1, %c0_i32 : i32
    %c0_i32_0 = arith.constant 0 : i32
    %c0_i32_1 = arith.constant 0 : i32
    return %2, %c0_i32_0 : i32, i32
  }
  func.func @transform_2(%arg0: i32, %arg1: i32) -> (i32, i32) {
    %c0_i32 = arith.constant 0 : i32
    %c0_i32_0 = arith.constant 0 : i32
    return %arg0, %c0_i32 : i32, i32
  }
}

</mosaic_0001>

<bundles_post_ra>
// kernel: tpu_custom_call.1
= control target key start
LH: loop header
LB: loop body
LE: loop exit
PB: predicated region body
PF: predicated region fallthrough
CT: control target
= control target key end

     0   :  { %7 = vsyncpa [#allocation3], 0  ;;  %s1026_s0 = inlined_call_operand.hbm [shape: f32[16,128], index: 0, kind: input, shape index: {}]   ;;  %s1027_s1 = inlined_call_operand.hbm [shape: f32[16,128], index: 1, kind: input, shape index: {}]   ;;  %s1028_s2 = inlined_call_operand.hbm [shape: f32[16,128], index: 2, kind: output, shape index: {}]  }
   0x1   :  { %9 = vsyncpa [#allocation3 + $0x1], 0 }
   0x2   :  { %10 = vsyncpa [#allocation6], 0 }
   0x3   :  { %12 = vsyncpa [#allocation6 + $0x1], 0 }
   0x4   :  { %13 = vsyncpa [#allocation4], 0 }
   0x5   :  { %15 = vsyncpa [#allocation4 + $0x1], 0  ;;  %s802_s9 = smov 0   ;;  %s804_s10 = smov 0  }
   0x6   :  { %s806_s11 = smov 0   ;;  %s808_s12 = smov 0  }
   0x7   :  { %s810_s13 = smov 0   ;;  %s812_s14 = smov 0  }
   0x8   :  { %s814_s15 = smov 0   ;;  %s816_s16 = smov 0  }
   0x9 LB: > { %s467_s17 = sadd.s32 4294967295, %s779_s16   ;;  %s468_s18 = sadd.s32 4294967294, %s779_s16   ;;  %s779_s16 = sphi %s816_s16, %s21_s16   ;;  %s775_s15 = sphi %s814_s15, %s1047_s15   ;;  %s771_s14 = sphi %s812_s14, %s1046_s14   ;;  %s767_s13 = sphi %s810_s13, %s1016_s13   ;;  %s763_s12 = sphi %s808_s12, %s1045_s12   ;;  %s759_s11 = sphi %s806_s11, %s1044_s11   ;;  %s755_s10 = sphi %s804_s10, %s1043_s10   ;;  %s751_s9 = sphi %s802_s9, %s1042_s9  }
   0xa   : > { %s33_s19 = sadd.s32 1, %s775_s15  ;;  %p748_p1 = scmp.ne.s32.totalorder %s767_s13, 0 }
   0xb   : > { %p35_p0 = scmp.ge.s32.totalorder %s33_s19, 2  ;;  %p54_p2 = scmp.eq.s32.totalorder %s779_s16, 0 }
   0xc   : > { %p59_p3 = scmp.ne.s32.totalorder %s767_s13, %s763_s12  ;;  %p60_p5 = scmp.eq.s32.totalorder %s467_s17, 0 }
   0xd   : > { %s1049_s19 = smov (%p35_p0, %s33_s19), 0  ;;  %p848_p4 = por %p748_p1, %p54_p2 }
   0xe   : > { %p852_p6 = por %p60_p5, %p59_p3  ;;  %s101_s22 = ssub.s32 %s775_s15, %s1049_s19 }
   0xf   : > { %p102_p7 = scmp.eq.s32.totalorder %s101_s22, 0  ;;  %s104_s23 = sadd.s32 1, %s759_s11 }
  0x10   : > { %s1032_s21 = scalar_select %p852_p6, 1, 0 }
  0x11   : > { %s860_s24 = scalar_select %p102_p7, %s759_s11, %s104_s23  }
  0x12   : > { %p114_p8 = scmp.ne.s32.totalorder %s759_s11, %s755_s10  ;;  %p115_p9 = scmp.eq.s32.totalorder %s467_s17, 1 }
  0x13   : > { %p120_p10 = scmp.ne.s32.totalorder %s755_s10, %s751_s9  ;;  %p121_p11 = scmp.eq.s32.totalorder %s468_s18, 1 }
  0x14   : > { %p866_p12 = por %p115_p9, %p114_p8  ;;  %p511_p1 = scmp.lt.s32.totalorder %s779_s16, 2 }
  0x15   : > { %p871_p0 = por %p121_p11, %p120_p10  ;;  %s781_s27 = smov [#allocation2]  }
  0x16   : > { %s1033_s25 = scalar_select %p866_p12, 1, 0 }
  0x17   : > { %s1034_s26 = scalar_select %p871_p0, 1, 0 }
  0x18   : > { %s155_s28 = sshll.u32 %s781_s27, 4  ;;  %p878_p2 = pnand %p511_p1, %p848_p4  ;;  %s156_s28 = int_to_ptr.vmem [resolvable:$true] %s155_s28 }
  0x19   : > { %s612_s4 = scalar_lea.hbm %s1026_s0, 256 }
  0x1a   : > { %p613_p3 = scmp.ne.s32.totalorder %s1026_s0, %s612_s4  ;;  %p614_p5 = pneg %p878_p2 }
  0x1b   : > { %p619_p8 = scmp.lt.u32.totalorder %s612_s4, %s612_s4  ;;  %p621_p9 = scmp.lt.u32.totalorder %s612_s4, %s1026_s0 }
  0x1c   : > { %p615_p7 = pnand %p614_p5, %p613_p3 }
  0x1d   : > { %p622_p10 = por %p621_p9, %p619_p8 }
  0x1e   : > { %p616_p4 = pneg %p615_p7 }
  0x20   : > { %p623_p11 = pnand %p622_p10, %p616_p4 }
  0x22   : > { %626 = shalt.err (!%p623_p11)
}
  0x23   : > { %s627_s12 = scalar_lea.vmem %s156_s28, 256  ;;  %s634_s17 = scalar_lea.vmem %s156_s28, 512 }
  0x24   : > { %p628_p1 = scmp.ne.s32.totalorder %s156_s28, %s627_s12  ;;  %p635_p12 = scmp.lt.s32.totalorder %s156_s28, %s156_s28 }
  0x25   : > { %p636_p6 = scmp.lt.s32.totalorder %s634_s17, %s627_s12 }
  0x26   : > { %p630_p13 = pnand %p628_p1, %p614_p5 }
  0x27   : > { %p637_p3 = por %p636_p6, %p635_p12 }
  0x28   : > { %p631_p0 = pneg %p630_p13 }
  0x2a   : > { %p638_p7 = pnand %p637_p3, %p631_p0 }
  0x2c   : > { %641 = shalt.err (!%p638_p7)
}
  0x2d   : > { %s782_s18 = smov 128   ;;  %s783_s20 = smov 8  }
  0x2e   : > { %503 = dma.hbm_to_vmem [thread:$0]  (!%p878_p2), %s1026_s0, 256, %s156_s28, [#allocation3], %s782_s18, %s782_s18, %s783_s20  }
  0x2f   : > { %p477_p13 = scmp.ge.s32.totalorder %s779_s16, 1  ;;  %p187_p4 = scmp.lt.s32.totalorder %s779_s16, 3 }
  0x30   : > { %s784_s30 = smov [#allocation5]   ;;  %s642_s6 = scalar_lea.hbm %s1027_s1, 256 }
  0x31   : > { %p909_p8 = pnand %p477_p13, %p187_p4  ;;  %s179_s3 = sshll.u32 %s784_s30, 4  ;;  %s180_s3 = int_to_ptr.vmem [resolvable:$true] %s179_s3 }
  0x32   : > { %p643_p6 = scmp.ne.s32.totalorder %s1027_s1, %s642_s6  ;;  %p649_p9 = scmp.lt.u32.totalorder %s642_s6, %s642_s6 }
  0x33   : > { %s1036_s27 = scalar_select %p909_p8, 1, 0 }
  0x34   : > { %p645_p12 = pnand %p643_p6, %p614_p5  ;;  %p651_p10 = scmp.lt.u32.totalorder %s642_s6, %s1027_s1 }
  0x36   : > { %p646_p0 = pneg %p645_p12  ;;  %p652_p11 = por %p651_p10, %p649_p9 }
  0x38   : > { %p653_p1 = pnand %p652_p11, %p646_p0 }
  0x3a   : > { %656 = shalt.err (!%p653_p1)
}
  0x3b   : > { %s657_s17 = scalar_lea.vmem %s180_s3, 256  ;;  %s664_s22 = scalar_lea.vmem %s180_s3, 512 }
  0x3c   : > { %p658_p3 = scmp.ne.s32.totalorder %s180_s3, %s657_s17  ;;  %p665_p4 = scmp.lt.s32.totalorder %s180_s3, %s180_s3 }
  0x3d   : > { %p666_p8 = scmp.lt.s32.totalorder %s664_s22, %s657_s17 }
  0x3e   : > { %p660_p7 = pnand %p658_p3, %p614_p5 }
  0x3f   : > { %p667_p6 = por %p666_p8, %p665_p4 }
  0x40   : > { %p661_p13 = pneg %p660_p7 }
  0x42   : > { %p668_p12 = pnand %p667_p6, %p661_p13 }
  0x44   : > { %671 = shalt.err (!%p668_p12)
}
  0x45   : > { %506 = dma.hbm_to_vmem [thread:$0]  (!%p878_p2), %s1027_s1, 256, %s180_s3, [#allocation6], %s782_s18, %s782_s18, %s783_s20  }
  0x46   : > { %p1037_p0 = scmp.ne.s32.totalorder %s1036_s27, 0 }
  0x47   : > { %s193_s4 = sand.u32 (!%p1037_p0), 1, %s767_s13   ;;  %p1038_p5 = scmp.ne.s32.totalorder (!%p1037_p0), %s1032_s21, 0 }
  0x48   : > { %191 = sbr.rel (%p1037_p0) target bundleno = 200 (0xc8), region = 28  ;;  %s478_s5 = sshll.u32 (!%p1037_p0), %s193_s4, 4 }
  0x49   : > { %s194_s6 = scalar_lea.sflag (!%p1037_p0), [#allocation3], %s193_s4  ;;  %s939_s7 = scalar_lea.vmem (!%p1037_p0), [#allocation2], %s478_s5 }
  0x4f   : > { %737 = dma.done.wait (%p1038_p5), %s194_s6, 256  }
  0x50   : > { %739 = vsyncadd (%p1038_p5), %s194_s6, 4294967040  ;;  %s203_s29 = scalar_lea.sflag [#allocation6], %s193_s4  ;;  %s945_s8 = scalar_lea.vmem [#allocation5], %s478_s5 }
  0x51   : > { %741 = dma.done.wait (%p1038_p5), %s203_s29, 256  }
  0x52   : > { %743 = vsyncadd (%p1038_p5), %s203_s29, 4294967040  ;;  %s229_s18 = sand.u32 1, %s755_s10   ;;  %v785_v0 = vmov 0.0   ;;  %p481_p2 = scmp.ge.s32.totalorder %s771_s14, 1 }
  0x53   : > { %s480_s20 = sshll.u32 %s229_s18, 3  ;;  %v250_v1 = vld [vmem:[%s939_s7] sm:$0xff] (!%p481_p2)  ;;  %v251_v2 = vld [vmem:[%s939_s7 + $0x8] sm:$0xff] (!%p481_p2) }
  0x54   : > { %s954_s27 = scalar_lea.vmem [#allocation7], %s480_s20  ;;  %249 = sbr.rel (%p481_p2) target bundleno = 128 (0x80), region = 44  ;;  %v252_v3 = vld [vmem:[%s945_s8] sm:$0xff] (!%p481_p2)  ;;  %v253_v4 = vld [vmem:[%s945_s8 + $0x8] sm:$0xff] (!%p481_p2)  ;;  %v254_v5 = vand.u32 (!%p481_p2), 2147483647, %v250_v1 }
  0x55   : > { %244 = vst [vmem:[%s954_s27] sm:$0xff] %v785_v0  ;;  %v255_v6 = vand.u32 (!%p481_p2), 2147483647, %v251_v2  ;;  %v262_v7 = vand.u32 (!%p481_p2), 2147483647, %v252_v3  ;;  %v263_v8 = vand.u32 (!%p481_p2), 2147483647, %v253_v4 }
  0x56   : > { %v256_v9 = vsub.f32 (!%p481_p2), 0.0, %v254_v5  ;;  %v280_v27 = vmax.f32 (!%p481_p2), %v252_v3, 0.0  ;;  %v282_v28 = vmin.f32 (!%p481_p2), %v250_v1, 0.0  ;;  %v281_v29 = vmax.f32 (!%p481_p2), %v253_v4, 0.0 }
  0x57   : > { %v257_v10 = vsub.f32 (!%p481_p2), 0.0, %v255_v6  ;;  %v264_v11 = vsub.f32 (!%p481_p2), 0.0, %v262_v7  ;;  %v265_v12 = vsub.f32 (!%p481_p2), 0.0, %v263_v8  ;;  %v283_v30 = vmin.f32 (!%p481_p2), %v251_v2, 0.0 }
  0x58   : > { %v258_v13 = vmul.f32 (!%p481_p2), 1.442695, %v256_v9  ;;  %v284_v31 = vsub.f32 (!%p481_p2), %v280_v27, %v282_v28 }
  0x59   : > { %v260_v14 = vmul.f32 (!%p481_p2), 1.442695, %v257_v10  ;;  %v266_v15 = vmul.f32 (!%p481_p2), 1.442695, %v264_v11  ;;  %v268_v16 = vmul.f32 (!%p481_p2), 1.442695, %v265_v12  ;;  %v285_v32 = vsub.f32 (!%p481_p2), %v281_v29, %v283_v30 }
  0x5a   : > { %588 = vpow2.f32 (!%p481_p2), %v258_v13  ;;  %v482_v33 = vadd.f32 (!%p481_p2), -1.3862944, %v284_v31 }
  0x5b   : > { %590 = vpow2.f32 %v260_v14  ;;  %v483_v35 = vadd.f32 -1.3862944, %v285_v32 }
  0x5c   : > { %592 = vpow2.f32 %v266_v15  ;;  %v291_v41 = vld [vmem:[%s954_s27] sm:$0xff] }
  0x5d   : > { %594 = vpow2.f32 %v268_v16 }
  0x64   : > { %v589_v17 = vpop.eup %588 }
  0x65   : > { %v591_v18 = vpop.eup %590  ;;  %v270_v19 = vadd.f32 1.0, %v589_v17 }
  0x66   : > { %v593_v20 = vpop.eup %592  ;;  %v271_v21 = vadd.f32 1.0, %v591_v18 }
  0x67   : > { %v595_v22 = vpop.eup %594  ;;  %v272_v23 = vadd.f32 1.0, %v593_v20 }
  0x68   : > { %v273_v24 = vadd.f32 1.0, %v595_v22 }
  0x69   : > { %v274_v25 = vmul.f32 %v272_v23, %v270_v19 }
  0x6a   : > { %v275_v26 = vmul.f32 %v273_v24, %v271_v21 }
  0x6b   : > { %596 = vlog2.f32 %v274_v25 }
  0x6c   : > { %598 = vlog2.f32 %v275_v26 }
  0x75   : > { %v597_v34 = vpop.eup %596 }
  0x76   : > { %v599_v36 = vpop.eup %598  ;;  %v277_v37 = vmul.f32 0.6931472, %v597_v34 }
  0x77   : > { %v279_v38 = vmul.f32 0.6931472, %v599_v36 }
  0x78   : > { %v288_v39 = vadd.f32 %v482_v33, %v277_v37 }
  0x79   : > { %v289_v40 = vadd.f32 %v483_v35, %v279_v38 }
  0x7b   : > { %v290_v42 = vadd.f32 %v289_v40, %v288_v39 }
  0x7d   : > { %v292_v43 = vadd.f32 %v291_v41, %v290_v42 }
  0x7f   : > { %293 = vst [vmem:[%s954_s27] sm:$0xff] %v292_v43 }
  0x80 PF: > { %p484_p8 = scmp.lt.s32.totalorder %s771_s14, 1 }
  0x81   : > { %v300_v44 = vld [vmem:[%s939_s7] sm:$0xff] (!%p484_p8)  ;;  %v301_v45 = vld [vmem:[%s939_s7 + $0x8] sm:$0xff] (!%p484_p8)  ;;  %v340_v8 = vlaneseq (!%p484_p8)  ;;  %s485_s21 = sshll.u32 (!%p484_p8), %s771_s14, 4 }
  0x82   : > { %297 = sbr.rel (%p484_p8) target bundleno = 175 (0xaf), region = 48  ;;  %v302_v46 = vld [vmem:[%s945_s8] sm:$0xff] (!%p484_p8)  ;;  %v303_v47 = vld [vmem:[%s945_s8 + $0x8] sm:$0xff] (!%p484_p8)  ;;  %v304_v48 = vand.u32 (!%p484_p8), 2147483647, %v300_v44  ;;  %v332_v7 = vmin.f32 (!%p484_p8), %v300_v44, 0.0 }
  0x83   : > { %v305_v49 = vand.u32 (!%p484_p8), 2147483647, %v301_v45  ;;  %v312_v50 = vand.u32 (!%p484_p8), 2147483647, %v302_v46  ;;  %v313_v51 = vand.u32 (!%p484_p8), 2147483647, %v303_v47 }
  0x84   : > { %v306_v52 = vsub.f32 (!%p484_p8), 0.0, %v304_v48  ;;  %v330_v6 = vmax.f32 (!%p484_p8), %v302_v46, 0.0  ;;  %v331_v9 = vmax.f32 (!%p484_p8), %v303_v47, 0.0  ;;  %v333_v10 = vmin.f32 (!%p484_p8), %v301_v45, 0.0  ;;  %s299_s3 = ssub.s32 (!%p484_p8), 16, %s485_s21 }
  0x85   : > { %v307_v53 = vsub.f32 (!%p484_p8), 0.0, %v305_v49  ;;  %v314_v54 = vsub.f32 (!%p484_p8), 0.0, %v312_v50  ;;  %v315_v55 = vsub.f32 (!%p484_p8), 0.0, %v313_v51  ;;  %v341_v12 = vshrl.u32 (!%p484_p8), %v340_v8, 7 }
  0x86   : > { %v308_v56 = vmul.f32 (!%p484_p8), 1.442695, %v306_v52  ;;  %v334_v11 = vsub.f32 (!%p484_p8), %v330_v6, %v332_v7  ;;  %v335_v13 = vsub.f32 (!%p484_p8), %v331_v9, %v333_v10  ;;  %v343_v16 = vstv (!%p484_p8), %s299_s3  ;;  %v349_v26 = vld [vmem:[%s954_s27] sm:$0xff] (!%p484_p8) }
  0x87   : > { %v310_v57 = vmul.f32 (!%p484_p8), 1.442695, %v307_v53  ;;  %v316_v58 = vmul.f32 (!%p484_p8), 1.442695, %v314_v54  ;;  %v318_v59 = vmul.f32 (!%p484_p8), 1.442695, %v315_v55  ;;  %vm344_vm0 = vcmp.lt.s32.totalorder (!%p484_p8), %v341_v12, %v343_v16 }
  0x88   : > { %600 = vpow2.f32 (!%p484_p8), %v308_v56  ;;  %v486_v14 = vadd.f32 (!%p484_p8), -1.3862944, %v334_v11  ;;  %v342_v15 = vadd.s32 (!%p484_p8), 8, %v341_v12  ;;  %v487_v18 = vadd.f32 (!%p484_p8), -1.3862944, %v335_v13 }
  0x89   : > { %602 = vpow2.f32 %v310_v57 }
  0x8a   : > { %604 = vpow2.f32 %v316_v58  ;;  %vm345_vm1 = vcmp.lt.s32.totalorder %v342_v15, %v343_v16 }
  0x8b   : > { %606 = vpow2.f32 %v318_v59 }
  0x92   : > { %v601_v60 = vpop.eup %600 }
  0x93   : > { %v603_v61 = vpop.eup %602  ;;  %v320_v62 = vadd.f32 1.0, %v601_v60 }
  0x94   : > { %v605_v63 = vpop.eup %604  ;;  %v321_v0 = vadd.f32 1.0, %v603_v61 }
  0x95   : > { %v607_v1 = vpop.eup %606  ;;  %v322_v2 = vadd.f32 1.0, %v605_v63 }
  0x96   : > { %v323_v3 = vadd.f32 1.0, %v607_v1 }
  0x97   : > { %v324_v4 = vmul.f32 %v322_v2, %v320_v62 }
  0x98   : > { %v325_v5 = vmul.f32 %v323_v3, %v321_v0 }
  0x99   : > { %608 = vlog2.f32 %v324_v4 }
  0x9a   : > { %610 = vlog2.f32 %v325_v5 }
  0xa3   : > { %v609_v17 = vpop.eup %608 }
  0xa4   : > { %v611_v19 = vpop.eup %610  ;;  %v327_v20 = vmul.f32 0.6931472, %v609_v17 }
  0xa5   : > { %v329_v21 = vmul.f32 0.6931472, %v611_v19 }
  0xa6   : > { %v338_v22 = vadd.f32 %v486_v14, %v327_v20 }
  0xa7   : > { %v339_v23 = vadd.f32 %v487_v18, %v329_v21 }
  0xa8   : > { %v346_v24 = vsel %vm344_vm0, %v338_v22, 0.0 }
  0xa9   : > { %v347_v25 = vsel %vm345_vm1, %v339_v23, 0.0 }
  0xaa   : > { %v348_v27 = vadd.f32 %v347_v25, %v346_v24 }
  0xac   : > { %v350_v28 = vadd.f32 %v349_v26, %v348_v27 }
  0xae   : > { %351 = vst [vmem:[%s954_s27] sm:$0xff] %v350_v28 }
  0xaf PF: > { %s489_s28 = sshll.u32 %s771_s14, 7  ;;  %s366_s23 = sshll.u32 %s954_s27, 4  ;;  %s367_s23 = int_to_ptr.vmem [resolvable:$true] %s366_s23 }
  0xb0   : > { %s976_s22 = scalar_lea.hbm %s1028_s2, %s489_s28  ;;  %s353_s30 = scalar_lea.sflag [#allocation4], %s229_s18 }
  0xb1   : > { %s672_s4 = scalar_lea.vmem %s367_s23, 128  ;;  %p1039_p10 = scmp.ne.s32.totalorder %s1033_s25, 0 }
  0xb2   : > { %p673_p9 = scmp.ne.s32.totalorder %s367_s23, %s672_s4  ;;  %s786_s5 = smov [#allocation7]  }
  0xb3   : > { %s676_s6 = sshll.u32 %s786_s5, 4  ;;  %s677_s6 = int_to_ptr.vmem [resolvable:$false] %s676_s6 }
  0xb4   : > { %p674_p11 = pnand %p673_p9, %p1039_p10  ;;  %s678_s7 = scalar_lea.vmem %s677_s6, 256 }
  0xb5   : > { %p679_p3 = scmp.lt.s32.totalorder %s367_s23, %s677_s6  ;;  %p680_p7 = scmp.lt.s32.totalorder %s678_s7, %s672_s4 }
  0xb6   : > { %p675_p1 = pneg %p674_p11 }
  0xb7   : > { %p681_p13 = por %p680_p7, %p679_p3 }
  0xb9   : > { %p682_p4 = pnand %p681_p13, %p675_p1 }
  0xbb   : > { %685 = shalt.err (!%p682_p4)
}
  0xbc   : > { %s686_s14 = scalar_lea.hbm %s976_s22, 128  ;;  %s690_s18 = scalar_lea.hbm %s1028_s2, 256 }
  0xbd   : > { %p687_p6 = scmp.ne.s32.totalorder %s976_s22, %s686_s14  ;;  %p691_p5 = scmp.lt.u32.totalorder %s976_s22, %s1028_s2 }
  0xbe   : > { %p692_p2 = scmp.lt.u32.totalorder %s690_s18, %s686_s14  ;;  %p694_p9 = scmp.lt.u32.totalorder %s686_s14, %s976_s22 }
  0xbf   : > { %p688_p12 = pnand %p687_p6, %p1039_p10 }
  0xc0   : > { %p693_p8 = por %p692_p2, %p691_p5 }
  0xc1   : > { %p689_p0 = pneg %p688_p12 }
  0xc2   : > { %p695_p11 = por %p694_p9, %p693_p8 }
  0xc4   : > { %p696_p1 = pnand %p695_p11, %p689_p0 }
  0xc6   : > { %699 = shalt.err (!%p696_p1)
}
  0xc7   : > { %498 = dma.vmem_to_hbm [thread:$0]  (%p1039_p10), %s367_s23, 128, %s976_s22, %s353_s30  }
  0xc8 PF: > { %s378_s21 = sand.u32 1, %s751_s9   ;;  %p1040_p3 = scmp.ne.s32.totalorder %s1034_s26, 0 }
  0xc9   : > { %p1041_p7 = scmp.ge.s32.totalorder %s779_s16, 2  ;;  %s379_s3 = scalar_lea.sflag [#allocation4], %s378_s21 }
  0xcb   : > { %p508_p13 = pnand %p1041_p7, %p1040_p3 }
  0xcd   : > { %745 = dma.done.wait (!%p508_p13), %s379_s3, 128  }
  0xce   : > { %747 = vsyncadd (!%p508_p13), %s379_s3, 4294967168  ;;  %s21_s16 = sadd.s32 1, %s779_s16   ;;  %s1042_s9 = smov %s755_s10 }
  0xcf   : > { %p18_p4 = scmp.ge.s32.totalorder %s21_s16, 4   ;;  %s1043_s10 = smov %s759_s11 }
  0xd0   : > { %s1044_s11 = smov %s860_s24  ;;  %s1045_s12 = smov %s767_s13 }
  0xd1   : > { %s1016_s13 = smov 0   ;;  %s1046_s14 = smov %s775_s15 }
  0xd2   : > { %s1047_s15 = smov %s1049_s19  ;;  %20 = sbr.rel (!%p18_p4) target bundleno = 9 (0x9), region = 98 }
  0xd9   :  { %384 = vsyncpa [#allocation3], 1 }
  0xda   :  { %386 = vsyncpa [#allocation3 + $0x1], 1 }
  0xdb   :  { %387 = vsyncpa [#allocation6], 1 }
  0xdc   :  { %389 = vsyncpa [#allocation6 + $0x1], 1 }
  0xdd   :  { %390 = vsyncpa [#allocation4], 1 }
  0xde   :  { %392 = vsyncpa [#allocation4 + $0x1], 1 }

</bundles_post_ra>
